<compile_context>
chip_gen: v7x
topology: tpu7x:2x2x1
jax: 0.10.0
libtpu: 0.0.40
codegen_flags: <defaults>
</compile_context>

<pallas_src>
import math

import jax
import jax.numpy as jnp
from jax.experimental import pallas as pl
from jax.experimental.pallas import tpu as pltpu

HIDDEN = 128
TB_CAP = 2048  # keeps the largest tile ~2.5 MiB of VMEM, safe even on v5e defaults


def actor_critic_kernel(x_ref, w1_ref, w2_ref, wh_ref, b_ref, out_ref):
    out_pad = out_ref.shape[-1]

    # fc1 + ReLU
    h1 = jnp.dot(x_ref[...], w1_ref[...], preferred_element_type=jnp.float32)
    h1 = jnp.maximum(h1 + b_ref[0:1, :], 0.0)

    # fc2 + ReLU
    h2 = jnp.dot(h1, w2_ref[...], preferred_element_type=jnp.float32)
    h2 = jnp.maximum(h2 + b_ref[1:2, :], 0.0)

    # fused actor+critic head, padded to OUT_PAD (=8) columns only
    out_ref[...] = (
        jnp.dot(h2, wh_ref[...], preferred_element_type=jnp.float32)
        + b_ref[2:3, :out_pad]
    )


def _round_up(n, m):
    return ((n + m - 1) // m) * m


def pack_params(params, action_dim):
    """Pack PyTorch-style params into kernel-friendly fused/padded arrays."""
    w1, b1, w2, b2, wa, ba, wc, bc = params
    H = w1.shape[1]

    # Fused head output width: actor logits + critic value, rounded to sublane (8).
    out_pad = max(8, _round_up(action_dim + 1, 8))
    assert action_dim + 1 <= out_pad, "action_dim+1 must fit in the padded head"

    # Fused head weight: [Wa | Wc | zeros] -> (H, out_pad).
    wh = jnp.zeros((H, out_pad), jnp.float32)
    wh = wh.at[:, :action_dim].set(wa)
    wh = wh.at[:, action_dim:action_dim + 1].set(wc)

    # Fused head bias, zero-padded to H so all biases pack into one (3, H) array.
    bh = jnp.zeros((1, H), jnp.float32)
    bh = bh.at[:, :action_dim].set(ba)
    bh = bh.at[:, action_dim:action_dim + 1].set(bc)
    b_packed = jnp.concatenate([b1, b2, bh], axis=0)

    return w1, w2, wh, b_packed


def _choose_tb(batch):
    """Batch tile: multiple of 8, <= TB_CAP; split so v7x gets >= 2 grid steps."""
    tb = min(TB_CAP, _round_up(batch, 8))
    if pl.cdiv(batch, tb) == 1 and batch >= 16:
        # Whole batch fits in one tile: halve it so the "parallel" grid axis has
        # at least 2 steps and the second TensorCore on v7x can participate.
        tb = _round_up(pl.cdiv(batch, 2), 8)
    return tb


def actor_critic_forward(x, packed_params, action_dim):
    """x: (B, state_dim) fp32. Returns (logits (B, action_dim), value (B, 1))."""
    w1, w2, wh, b = packed_params
    B, state_dim = x.shape
    H = w1.shape[1]
    out_pad = wh.shape[1]

    TB = _choose_tb(B)
    grid = (pl.cdiv(B, TB),)  # ragged last block handled by Pallas (no jnp.pad)

    resident = lambda i: (0, 0)

    out = pl.pallas_call(
        actor_critic_kernel,
        out_shape=jax.ShapeDtypeStruct((B, out_pad), jnp.float32),
        grid_spec=pltpu.PrefetchScalarGridSpec(
            num_scalar_prefetch=0,
            grid=grid,
            in_specs=[
                # x: tiled over batch rows
                pl.BlockSpec((TB, state_dim), lambda i: (i, 0)),
                # weights / biases: resident in VMEM across grid steps, single buffer
                pl.BlockSpec((state_dim, H), resident, pipeline_mode=pl.Buffered(1)),
                pl.BlockSpec((H, H), resident, pipeline_mode=pl.Buffered(1)),
                pl.BlockSpec((H, out_pad), resident, pipeline_mode=pl.Buffered(1)),
                pl.BlockSpec((3, H), resident, pipeline_mode=pl.Buffered(1)),
            ],
            out_specs=pl.BlockSpec((TB, out_pad), lambda i: (i, 0)),
        ),
        compiler_params=pltpu.CompilerParams(
            dimension_semantics=("parallel",),
        ),
    )(x, w1, w2, wh, b)

    # Mandatory slices: padding columns (>= action_dim+1) are zeros and must not
    # be consumed by any downstream softmax over the padded slab.
    logits = out[:, :action_dim]
    value = out[:, action_dim:action_dim + 1]
    return logits, value


def init_params(key, state_dim, action_dim, hidden=HIDDEN):
    """Deterministic init mimicking torch.nn.Linear default (uniform +-1/sqrt(fan_in)).

    Weights are stored transposed relative to PyTorch, i.e. (in, out).
    """
    def linear(k, fan_in, fan_out):
        kw, kb = jax.random.split(k)
        bound = 1.0 / math.sqrt(fan_in)
        w = jax.random.uniform(kw, (fan_in, fan_out), jnp.float32, -bound, bound)
        bias = jax.random.uniform(kb, (1, fan_out), jnp.float32, -bound, bound)
        return w, bias

    k1, k2, k3, k4 = jax.random.split(key, 4)
    w1, b1 = linear(k1, state_dim, hidden)
    w2, b2 = linear(k2, hidden, hidden)
    wa, ba = linear(k3, hidden, action_dim)
    wc, bc = linear(k4, hidden, 1)
    return (w1, b1, w2, b2, wa, ba, wc, bc)


def reference_forward(x, params):
    w1, b1, w2, b2, wa, ba, wc, bc = params
    h1 = jnp.maximum(x @ w1 + b1, 0.0)
    h2 = jnp.maximum(h1 @ w2 + b2, 0.0)
    return h2 @ wa + ba, h2 @ wc + bc


if __name__ == "__main__":
    # LunarLander-v2: state_dim=8, action_dim=4
    state_dim, action_dim = 8, 4

    key = jax.random.PRNGKey(0)
    kx1, kx2, kp = jax.random.split(key, 3)
    params = init_params(kp, state_dim, action_dim)
    packed = pack_params(params, action_dim)

    # Two batch sizes: tiny single-tile path, and a ragged >=2-step grid path.
    for batch, kx in ((8, kx1), (50, kx2)):
        x = jax.random.normal(kx, (batch, state_dim), dtype=jnp.float32)

        logits, value = actor_critic_forward(x, packed, action_dim)
        logits = jax.block_until_ready(logits)
        value = jax.block_until_ready(value)

        ref_logits, ref_value = reference_forward(x, params)
        assert logits.shape == (batch, action_dim)
        assert value.shape == (batch, 1)
        assert jnp.allclose(logits, ref_logits, atol=2e-5, rtol=2e-5)
        assert jnp.allclose(value, ref_value, atol=2e-5, rtol=2e-5)

    # TODO(synk): PPO sampling/log-prob (Categorical) and the training loop are
    # outside the module's forward() and intentionally not fused here.
    print("KERNEL_OK")
</pallas_src>

<mosaic_0001>
module attributes {stable_mosaic.version = 11 : i64} {
  func.func @actor_critic_kernel(%arg0: i32, %arg1: memref<8x8xf32, #tpu.memory_space<vmem>>, %arg2: memref<8x128xf32, #tpu.memory_space<vmem>>, %arg3: memref<128x128xf32, #tpu.memory_space<vmem>>, %arg4: memref<128x8xf32, #tpu.memory_space<vmem>>, %arg5: memref<3x128xf32, #tpu.memory_space<vmem>>, %arg6: memref<8x8xf32, #tpu.memory_space<vmem>>) attributes {dimension_semantics = [#tpu.dimension_semantics<parallel>], iteration_bounds = array<i64: 1>, scalar_prefetch = 0 : i64, scratch_operands = 0 : i64, tpu.core_type = #tpu.core_type<tc>, window_params = [{transform_indices = @transform_0, window_bounds = array<i64: 8, 8>}, {pipeline_mode = #tpu.pipeline_mode<synchronous>, transform_indices = @transform_1, window_bounds = array<i64: 8, 128>}, {pipeline_mode = #tpu.pipeline_mode<synchronous>, transform_indices = @transform_2, window_bounds = array<i64: 128, 128>}, {pipeline_mode = #tpu.pipeline_mode<synchronous>, transform_indices = @transform_3, window_bounds = array<i64: 128, 8>}, {pipeline_mode = #tpu.pipeline_mode<synchronous>, transform_indices = @transform_4, window_bounds = array<i64: 3, 128>}, {transform_indices = @transform_5, window_bounds = array<i64: 8, 8>}]} {
    %c0 = arith.constant 0 : index
    %c0_0 = arith.constant 0 : index
    %0 = vector.load %arg1[%c0, %c0_0] : memref<8x8xf32, #tpu.memory_space<vmem>>, vector<8x8xf32>
    %c0_1 = arith.constant 0 : index
    %c0_2 = arith.constant 0 : index
    %1 = vector.load %arg2[%c0_1, %c0_2] : memref<8x128xf32, #tpu.memory_space<vmem>>, vector<8x128xf32>
    %cst = arith.constant dense<0.000000e+00> : vector<8x128xf32>
    %2 = tpu.matmul %0, %1, %cst {dimension_numbers = #tpu.dot_dimension_numbers<[1], [0], [0], [1], [0, 0, 1, 1], [], []>} : vector<8x8xf32>, vector<8x128xf32>, vector<8x128xf32> -> vector<8x128xf32>
    %c0_3 = arith.constant 0 : index
    %c0_4 = arith.constant 0 : index
    %3 = vector.load %arg5[%c0_3, %c0_4] : memref<3x128xf32, #tpu.memory_space<vmem>>, vector<1x128xf32>
    %4 = vector.broadcast %3 : vector<1x128xf32> to vector<8x128xf32>
    %5 = arith.addf %2, %4 : vector<8x128xf32>
    %cst_5 = arith.constant 0.000000e+00 : f32
    %6 = vector.broadcast %cst_5 : f32 to vector<8x128xf32>
    %7 = arith.maximumf %5, %6 : vector<8x128xf32>
    %c0_6 = arith.constant 0 : index
    %c0_7 = arith.constant 0 : index
    %8 = vector.load %arg3[%c0_6, %c0_7] : memref<128x128xf32, #tpu.memory_space<vmem>>, vector<128x128xf32>
    %cst_8 = arith.constant dense<0.000000e+00> : vector<8x128xf32>
    %9 = tpu.matmul %7, %8, %cst_8 {dimension_numbers = #tpu.dot_dimension_numbers<[1], [0], [0], [1], [0, 0, 1, 1], [], []>} : vector<8x128xf32>, vector<128x128xf32>, vector<8x128xf32> -> vector<8x128xf32>
    %c1 = arith.constant 1 : index
    %c0_9 = arith.constant 0 : index
    %10 = vector.load %arg5[%c1, %c0_9] : memref<3x128xf32, #tpu.memory_space<vmem>>, vector<1x128xf32>
    %11 = vector.broadcast %10 : vector<1x128xf32> to vector<8x128xf32>
    %12 = arith.addf %9, %11 : vector<8x128xf32>
    %cst_10 = arith.constant 0.000000e+00 : f32
    %13 = vector.broadcast %cst_10 : f32 to vector<8x128xf32>
    %14 = arith.maximumf %12, %13 : vector<8x128xf32>
    %c0_11 = arith.constant 0 : index
    %c0_12 = arith.constant 0 : index
    %15 = vector.load %arg4[%c0_11, %c0_12] : memref<128x8xf32, #tpu.memory_space<vmem>>, vector<128x8xf32>
    %cst_13 = arith.constant dense<0.000000e+00> : vector<8x8xf32>
    %16 = tpu.matmul %14, %15, %cst_13 {dimension_numbers = #tpu.dot_dimension_numbers<[1], [0], [0], [1], [0, 0, 1, 1], [], []>} : vector<8x128xf32>, vector<128x8xf32>, vector<8x8xf32> -> vector<8x8xf32>
    %c2 = arith.constant 2 : index
    %c0_14 = arith.constant 0 : index
    %17 = vector.load %arg5[%c2, %c0_14] : memref<3x128xf32, #tpu.memory_space<vmem>>, vector<1x8xf32>
    %18 = vector.broadcast %17 : vector<1x8xf32> to vector<8x8xf32>
    %19 = arith.addf %16, %18 : vector<8x8xf32>
    %c0_15 = arith.constant 0 : index
    %c0_16 = arith.constant 0 : index
    %20 = vector.load %arg6[%c0_15, %c0_16] : memref<8x8xf32, #tpu.memory_space<vmem>>, vector<8x8xf32>
    tpu.vector_store %arg6[%c0_15, %c0_16], %19 {strides = array<i32>} : memref<8x8xf32, #tpu.memory_space<vmem>>, vector<8x8xf32>,
    return
  }
  func.func @transform_0(%arg0: i32) -> (i32, i32) {
    %c0_i32 = arith.constant 0 : i32
    %c0_i32_0 = arith.constant 0 : i32
    return %arg0, %c0_i32 : i32, i32
  }
  func.func @transform_1(%arg0: i32) -> (i32, i32) {
    %c0_i32 = arith.constant 0 : i32
    %c0_i32_0 = arith.constant 0 : i32
    %c0_i32_1 = arith.constant 0 : i32
    return %c0_i32, %c0_i32_0 : i32, i32
  }
  func.func @transform_2(%arg0: i32) -> (i32, i32) {
    %c0_i32 = arith.constant 0 : i32
    %c0_i32_0 = arith.constant 0 : i32
    %c0_i32_1 = arith.constant 0 : i32
    return %c0_i32, %c0_i32_0 : i32, i32
  }
  func.func @transform_3(%arg0: i32) -> (i32, i32) {
    %c0_i32 = arith.constant 0 : i32
    %c0_i32_0 = arith.constant 0 : i32
    %c0_i32_1 = arith.constant 0 : i32
    return %c0_i32, %c0_i32_0 : i32, i32
  }
  func.func @transform_4(%arg0: i32) -> (i32, i32) {
    %c0_i32 = arith.constant 0 : i32
    %c0_i32_0 = arith.constant 0 : i32
    %c0_i32_1 = arith.constant 0 : i32
    return %c0_i32, %c0_i32_0 : i32, i32
  }
  func.func @transform_5(%arg0: i32) -> (i32, i32) {
    %c0_i32 = arith.constant 0 : i32
    %c0_i32_0 = arith.constant 0 : i32
    return %arg0, %c0_i32 : i32, i32
  }
}

</mosaic_0001>

<bundles_post_ra>
// kernel: tpu_custom_call.1
= control target key start
LH: loop header
LB: loop body
LE: loop exit
PB: predicated region body
PF: predicated region fallthrough
CT: control target
= control target key end

     0   :  { %10 = vsyncpa [#allocation3], 0  ;;  %s718_s0 = inlined_call_operand.vmem [shape: f32[8,8], index: 0, kind: input, shape index: {}]   ;;  %s719_s1 = inlined_call_operand.hbm [shape: f32[8,128], index: 1, kind: input, shape index: {}]   ;;  %s720_s2 = inlined_call_operand.vmem [shape: f32[128,128], index: 2, kind: input, shape index: {}]   ;;  %s721_s3 = inlined_call_operand.vmem [shape: f32[128,8], index: 3, kind: input, shape index: {}]   ;;  %s722_s4 = inlined_call_operand.vmem [shape: f32[3,128], index: 4, kind: input, shape index: {}]   ;;  %s723_s5 = inlined_call_operand.hbm [shape: f32[8,8], index: 5, kind: output, shape index: {}]  }
   0x1   :  { %11 = vsyncpa [#allocation4], 0  ;;  %s530_s18 = smov [#allocation2]   ;;  %s482_s22 = scalar_lea.hbm %s719_s1, 128 }
   0x2   :  { %s20_s19 = sshll.u32 %s530_s18, 4  ;;  %p483_p0 = scmp.ne.s32.totalorder %s719_s1, %s482_s22  ;;  %s21_s19 = int_to_ptr.vmem [resolvable:$true] %s20_s19 }
   0x3   :  { %p486_p1 = scmp.lt.u32.totalorder %s482_s22, %s719_s1 }
   0x5   :  { %p488_p2 = pnand %p486_p1, %p483_p0 }
   0x7   :  { %491 = shalt.err (!%p488_p2)
}
   0x8   :  { %s492_s27 = scalar_lea.vmem %s21_s19, 128  ;;  %p497_p4 = scmp.lt.s32.totalorder %s21_s19, %s21_s19 }
   0x9   :  { %p493_p3 = scmp.ne.s32.totalorder %s21_s19, %s492_s27  ;;  %p498_p5 = scmp.lt.s32.totalorder %s492_s27, %s492_s27 }
   0xb   :  { %p499_p6 = por %p498_p5, %p497_p4 }
   0xd   :  { %p500_p7 = pnand %p499_p6, %p493_p3 }
   0xf   :  { %503 = shalt.err (!%p500_p7)
}
  0x10   :  { %23 = dma.hbm_to_vmem [thread:$0]  %s719_s1, 128, %s21_s19, [#allocation3]  }
  0x11   :  { %526 = dma.done.wait [#allocation3], 128  }
  0x12   :  { %527 = vsyncadd [#allocation3], 4294967168  ;;  %v531_v0 = vmov 0.0   ;;  %vm532_vm0 = vmmov 0   ;;  %v533_v1 = vmov 0.0|0.0   ;;  %vm40_vm1 = vcmask 64512  }
  0x13   :  { %354 = vmatprep.subr.mxu0 %v531_v0  ;;  %356 = vmatprep.mubr.msk.f32.mxu0 %vm532_vm0, %v531_v0  ;;  %v34_v2 = vld [vmem:[#allocation2] sm:$0xff]  ;;  %v116_v5 = vld [vmem:[%s720_s2 + $0x8] sm:$0xff]  ;;  %v117_v6 = vld [vmem:[%s720_s2 + $0x10] sm:$0xff]  ;;  %s534_s19 = smov [#allocation5]  }
  0x14   :  { %429 = vmatprep.subr.bf16.mxu1 %v533_v1  ;;  %391 = vmatprep.mubr.msk.f32.mxu1 %vm532_vm0, %v531_v0  ;;  %v33_v3 = vld [vmem:[%s718_s0] sm:$0xff]  ;;  %v118_v7 = vld [vmem:[%s720_s2 + $0x18] sm:$0xff]  ;;  %v120_v11 = vld [vmem:[%s720_s2 + $0x28] sm:$0xff]  ;;  %s305_s20 = sshll.u32 %s534_s19, 4  ;;  %s306_s20 = int_to_ptr.vmem [resolvable:$true] %s305_s20 }
  0x15   :  { %v115_v4 = vld [vmem:[%s720_s2] sm:$0xff]  ;;  %355 = vmatpush3.msra.mxu0 %v34_v2  ;;  %v433_v9 = vpack.c.bf16 %v118_v7, %v117_v6  ;;  %v121_v13 = vld [vmem:[%s720_s2 + $0x30] sm:$0xff]  ;;  %v122_v14 = vld [vmem:[%s720_s2 + $0x38] sm:$0xff]  ;;  %p509_p9 = scmp.lt.s32.totalorder %s306_s20, %s306_s20 }
  0x16   :  { %357 = vmatmul.mubr.msk.f32.vlgmr.msra.gmra.mrb[0].mxu0 %vm40_vm1, %v33_v3  ;;  %v430_v8 = vpack.c.bf16 %v116_v5, %v115_v4  ;;  %453 = vmatprep.subr.bf16.mxu0 %v533_v1  ;;  %v119_v10 = vld [vmem:[%s720_s2 + $0x20] sm:$0xff]  ;;  %v439_v15 = vpack.c.bf16 %v122_v14, %v121_v13  ;;  %v124_v17 = vld [vmem:[%s720_s2 + $0x48] sm:$0xff]  ;;  %v125_v19 = vld [vmem:[%s720_s2 + $0x50] sm:$0xff] }
  0x17   :  { %426 = vmatprep.mubr.msk.f32.mxu0 %vm532_vm0, %v531_v0  ;;  %v436_v12 = vpack.c.bf16 %v120_v11, %v119_v10  ;;  %v123_v16 = vld [vmem:[%s720_s2 + $0x40] sm:$0xff]  ;;  %v126_v20 = vld [vmem:[%s720_s2 + $0x58] sm:$0xff]  ;;  %v128_v23 = vld [vmem:[%s720_s2 + $0x68] sm:$0xff] }
  0x18   :  { %431 = vmatpush3.bf16.msra.mxu1 %v430_v8  ;;  %v442_v18 = vpack.c.bf16 %v124_v17, %v123_v16  ;;  %v445_v21 = vpack.c.bf16 %v126_v20, %v125_v19  ;;  %v127_v22 = vld [vmem:[%s720_s2 + $0x60] sm:$0xff]  ;;  %v129_v25 = vld [vmem:[%s720_s2 + $0x70] sm:$0xff]  ;;  %v130_v26 = vld [vmem:[%s720_s2 + $0x78] sm:$0xff] }
  0x19   :  { %432 = vmatprep.subr.bf16.mxu1 %v533_v1  ;;  %v448_v24 = vpack.c.bf16 %v128_v23, %v127_v22  ;;  %v451_v27 = vpack.c.bf16 %v130_v26, %v129_v25  ;;  %v207_v28 = vld [vmem:[%s721_s3] sm:$0xff]  ;;  %v208_v29 = vld [vmem:[%s721_s3 + $0x8] sm:$0xff]  ;;  %v209_v30 = vld [vmem:[%s721_s3 + $0x10] sm:$0xff] }
  0x1a   :  { %v454_v31 = vpack.c.bf16 %v208_v29, %v207_v28  ;;  %v210_v32 = vld [vmem:[%s721_s3 + $0x18] sm:$0xff]  ;;  %v211_v34 = vld [vmem:[%s721_s3 + $0x20] sm:$0xff]  ;;  %v212_v35 = vld [vmem:[%s721_s3 + $0x28] sm:$0xff] }
  0x1b   :  { %v457_v33 = vpack.c.bf16 %v210_v32, %v209_v30  ;;  %v460_v36 = vpack.c.bf16 %v212_v35, %v211_v34  ;;  %v213_v37 = vld [vmem:[%s721_s3 + $0x30] sm:$0xff]  ;;  %v214_v38 = vld [vmem:[%s721_s3 + $0x38] sm:$0xff]  ;;  %v215_v40 = vld [vmem:[%s721_s3 + $0x40] sm:$0xff] }
  0x1c   :  { %434 = vmatpush3.bf16.msra.mxu1 %v433_v9  ;;  %455 = vmatpush3.bf16.msra.mxu0 %v454_v31  ;;  %v463_v39 = vpack.c.bf16 %v214_v38, %v213_v37  ;;  %v216_v41 = vld [vmem:[%s721_s3 + $0x48] sm:$0xff]  ;;  %v217_v43 = vld [vmem:[%s721_s3 + $0x50] sm:$0xff]  ;;  %v218_v44 = vld [vmem:[%s721_s3 + $0x58] sm:$0xff] }
  0x1d   :  { %435 = vmatprep.subr.bf16.mxu1 %v533_v1  ;;  %456 = vmatprep.subr.bf16.mxu0 %v533_v1  ;;  %v466_v42 = vpack.c.bf16 %v216_v41, %v215_v40  ;;  %v469_v45 = vpack.c.bf16 %v218_v44, %v217_v43  ;;  %v219_v46 = vld [vmem:[%s721_s3 + $0x60] sm:$0xff]  ;;  %v220_v47 = vld [vmem:[%s721_s3 + $0x68] sm:$0xff]  ;;  %v221_v54 = vld [vmem:[%s721_s3 + $0x70] sm:$0xff] }
  0x1e   :  { %v472_v48 = vpack.c.bf16 %v220_v47, %v219_v46  ;;  %v314_v49 = vld [vmem:[%s722_s4] ss:$0 sm:$0xff]  ;;  %v222_v55 = vld [vmem:[%s721_s3 + $0x78] sm:$0xff]  ;;  %v316_v57 = vld [vmem:[%s722_s4 + $0x1] ss:$0 sm:$0xff]  ;;  %s504_s3 = scalar_lea.vmem %s306_s20, 128 }
  0x1f   :  { %v475_v56 = vpack.c.bf16 %v222_v55, %v221_v54  ;;  %v317_v62 = vld [vmem:[%s722_s4 + $0x2] ss:$0 sm:$0xff]  ;;  %p505_p8 = scmp.ne.s32.totalorder %s306_s20, %s504_s3  ;;  %p510_p10 = scmp.lt.s32.totalorder %s504_s3, %s504_s3 }
  0x20   :  { %437 = vmatpush3.bf16.msra.mxu1 %v436_v12  ;;  %458 = vmatpush3.bf16.msra.mxu0 %v457_v33 }
  0x21   :  { %438 = vmatprep.subr.bf16.mxu1 %v533_v1  ;;  %459 = vmatprep.subr.bf16.mxu0 %v533_v1  ;;  %p511_p11 = por %p510_p10, %p509_p9 }
  0x23   :  { %p512_p12 = pnand %p511_p11, %p505_p8 }
  0x24   :  { %440 = vmatpush3.bf16.msra.mxu1 %v439_v15  ;;  %461 = vmatpush3.bf16.msra.mxu0 %v460_v36 }
  0x25   :  { %441 = vmatprep.subr.bf16.mxu1 %v533_v1  ;;  %462 = vmatprep.subr.bf16.mxu0 %v533_v1 }
  0x28   :  { %443 = vmatpush3.bf16.msra.mxu1 %v442_v18  ;;  %464 = vmatpush3.bf16.msra.mxu0 %v463_v39 }
  0x29   :  { %444 = vmatprep.subr.bf16.mxu1 %v533_v1  ;;  %465 = vmatprep.subr.bf16.mxu0 %v533_v1 }
  0x2c   :  { %446 = vmatpush3.bf16.msra.mxu1 %v445_v21  ;;  %467 = vmatpush3.bf16.msra.mxu0 %v466_v42 }
  0x2d   :  { %447 = vmatprep.subr.bf16.mxu1 %v533_v1  ;;  %468 = vmatprep.subr.bf16.mxu0 %v533_v1 }
  0x30   :  { %449 = vmatpush3.bf16.msra.mxu1 %v448_v24  ;;  %470 = vmatpush3.bf16.msra.mxu0 %v469_v45 }
  0x31   :  { %450 = vmatprep.subr.bf16.mxu1 %v533_v1  ;;  %471 = vmatprep.subr.bf16.mxu0 %v533_v1 }
  0x34   :  { %452 = vmatpush3.bf16.msra.mxu1 %v451_v27  ;;  %473 = vmatpush3.bf16.msra.mxu0 %v472_v48 }
  0x35   :  { %474 = vmatprep.subr.bf16.mxu0 %v533_v1 }
  0x38   :  { %476 = vmatpush3.bf16.msra.mxu0 %v475_v56 }
  0xe9   :  { %v110_v50 = vpop.f32.mrb[0].mxu0 }
  0xea   :  { %v111_v51 = vadd.f32 %v314_v49, %v110_v50  ;;  %v358_v52 = vpop.f32.mrb[1].mxu0 }
  0xec   :  { %v114_v53 = vmax.f32 %v111_v51, 0.0 }
  0xee   :  { %392 = vmatmul.mubr.f32.vlgmr.msra.gmra.mrb[0].mxu1 %v114_v53 }
 0x1c1   :  { %v202_v58 = vpop.f32.mrb[0].mxu1 }
 0x1c2   :  { %v203_v59 = vadd.f32 %v316_v57, %v202_v58  ;;  %v393_v60 = vpop.f32.mrb[1].mxu1 }
 0x1c4   :  { %v206_v61 = vmax.f32 %v203_v59, 0.0 }
 0x1c6   :  { %427 = vmatmul.mubr.f32.vlgmr.msra.gmra.mrb[2].mxu0 %v206_v61 }
 0x299   :  { %v294_v63 = vpop.f32.mrb[2].mxu0 }
 0x29a   :  { %v295_v0 = vadd.f32 %v317_v62, %v294_v63  ;;  %v428_v1 = vpop.f32.mrb[3].mxu0 }
 0x29c   :  { %298 = vst.msk [vmem:[#allocation5] sm:$0xff] %vm40_vm1, %v295_v0 }
 0x29d   :  { %515 = shalt.err (!%p512_p12)
}
 0x29e   :  { %s516_s23 = scalar_lea.hbm %s723_s5, 128 }
 0x29f   :  { %p517_p13 = scmp.ne.s32.totalorder %s723_s5, %s516_s23  ;;  %p520_p0 = scmp.lt.u32.totalorder %s516_s23, %s723_s5 }
 0x2a1   :  { %p522_p1 = pnand %p520_p0, %p517_p13 }
 0x2a3   :  { %525 = shalt.err (!%p522_p1)
}
 0x2a4   :  { %308 = dma.vmem_to_hbm [thread:$0]  %s306_s20, 128, %s723_s5, [#allocation4]  }
 0x2a5   :  { %528 = dma.done.wait [#allocation4], 128  }
 0x2a6   :  { %529 = vsyncadd [#allocation4], 4294967168 }
 0x2a7   :  { %312 = vsyncpa [#allocation3], 1 }
 0x2a8   :  { %313 = vsyncpa [#allocation4], 1 }

</bundles_post_ra>
